<compile_context>
chip_gen: v7x
topology: tpu7x:2x2x1
jax: 0.10.0
libtpu: 0.0.40
codegen_flags: <defaults>
</compile_context>

<pallas_src>
import functools

import jax
import jax.numpy as jnp
from jax.experimental import pallas as pl
from jax.experimental.pallas import tpu as pltpu

# Degrees of the rational: numerator degree 5 (6 coeffs), denominator 4 coeffs.
NUM_DEG = 5
DEN_DEG = 4

# Deterministic parameter init (synthetic; approximates a leaky_relu-like rational).
NUMERATOR_INIT = jnp.array(
    [0.0218, 0.5000, 1.5957, 1.1915, 0.2500, 0.0218], dtype=jnp.float32
)
DENOMINATOR_INIT = jnp.array([2.3830, 0.0000, 1.0000, 0.0000], dtype=jnp.float32)
# AugmentedRational's own affine params: [horizontal_scale, in_bias,
# vertical_scale, out_bias] -- init per __init__: scales=1.0, biases=0.0.
AUG_PARAMS_INIT = jnp.array([1.0, 0.0, 1.0, 0.0], dtype=jnp.float32)

_LANE = 128
_SUBLANE = 8
_TARGET_GRID_STEPS = 8  # aim for >= ~8 pipelined steps on medium/large inputs


def _pick_max_block_bytes():
    """2 MiB blocks by default (safe for v5e's 16 MiB default scoped VMEM with
    in+out double buffering); 4 MiB on chips with >= 64 MiB physical VMEM per
    core (v6e/v7x), where 16 MiB of buffers fits the 32 MiB default limit."""
    try:
        vmem_bytes = pltpu.get_tpu_info().vmem_capacity_bytes
    except Exception:  # unknown chip / query unavailable -> conservative
        vmem_bytes = 0
    return (4 << 20) if vmem_bytes >= (64 << 20) else (2 << 20)


_MAX_BLOCK_BYTES = _pick_max_block_bytes()


def _choose_width(n):
    """Largest lane-dense width (multiple of 128, <= 1024) dividing n exactly."""
    for mult in range(8, 0, -1):
        w = mult * _LANE
        if n % w == 0:
            return w
    return None


def _aug_rational_kernel(num_ref, den_ref, aug_ref, x_ref, o_ref):
    """Elementwise augmented-rational activation on one (block_rows, width) tile.

    num_ref: SMEM (6,)  numerator coeffs a0..a5
    den_ref: SMEM (4,)  denominator coeffs b1..b4
    aug_ref: SMEM (4,)  [horizontal_scale, in_bias, vertical_scale, out_bias]
    x_ref / o_ref: VMEM (block_rows, width)
    """
    x = x_ref[...].astype(jnp.float32)

    h_scale = aug_ref[0]
    in_bias = aug_ref[1]
    v_scale = aug_ref[2]
    out_bias = aug_ref[3]

    # Hoist every SMEM scalar read once and fold vertical_scale into the
    # numerator coefficients on the scalar side (scalar muls are free; saves
    # one vector multiply per element at the end).
    a = [v_scale * num_ref[i] for i in range(NUM_DEG + 1)]
    b_abs = [jnp.abs(den_ref[k]) for k in range(DEN_DEG)]

    z = h_scale * x + in_bias

    # Numerator  v*P(z)  via Horner's rule (unrolled).
    p = a[NUM_DEG] * z + a[NUM_DEG - 1]
    for i in range(NUM_DEG - 2, -1, -1):
        p = p * z + a[i]

    # Denominator (version 'A'):
    #   Q(z) = 1 + sum_k |b_k z^k| = 1 + |z| * Horner_{|z|}(|b_1|..|b_4|)
    az = jnp.abs(z)
    q = b_abs[DEN_DEG - 1]
    for k in range(DEN_DEG - 2, -1, -1):
        q = q * az + b_abs[k]
    q = q * az + 1.0

    # Approximate reciprocal on the EUP (separate issue slot, ~free) + one
    # Newton-Raphson step in the VPU.  Q >= 1 makes the refinement
    # well-conditioned; residual relative error is <= (seed error)^2.
    r = pl.reciprocal(q, approx=True)
    r = r * (2.0 - q * r)

    o_ref[...] = (p * r + out_bias).astype(o_ref.dtype)


@functools.partial(jax.jit, static_argnames=("donate_input",))
def augmented_rational(x, numerator, denominator, aug_params, *, donate_input=False):
    """Apply AugmentedRational elementwise to a tensor `x` of any shape/dtype.

    Set donate_input=True only when the caller donates `x`'s buffer; the
    output then aliases the input HBM allocation (input_output_aliases).
    """
    orig_shape = x.shape
    orig_dtype = x.dtype

    flat = x.reshape(-1)  # contiguous reshape: no HBM copy
    n = flat.shape[0]

    width = _choose_width(n)
    n_pad = 0
    if width is None:
        # Ragged fallback (n not a multiple of 128): pad one copy + slice back.
        # TODO(synk): a rank-1 ragged-boundary tiling would avoid this copy,
        # but 1-D vector layouts are sublane-sparse on TPU; keep the padded
        # 2-D path for these (rare) shapes.
        width = _SUBLANE * _LANE
        n_pad = (-n) % width
        flat = jnp.pad(flat, (0, n_pad))
    rows = flat.shape[0] // width
    x2d = flat.reshape(rows, width)

    # Block rows: multiple of 8 (or the full row count), sized for >= ~8 grid
    # steps so the pipeline stays fed (and v7x can split across TensorCores),
    # capped so in+out double buffering fits the default scoped-VMEM limit.
    max_rows = max(
        _SUBLANE,
        ((_MAX_BLOCK_BYTES // (width * x2d.dtype.itemsize)) // _SUBLANE) * _SUBLANE,
    )
    if rows <= _SUBLANE:
        br = rows
    else:
        br = -(-rows // _TARGET_GRID_STEPS)                       # cdiv
        br = ((br + _SUBLANE - 1) // _SUBLANE) * _SUBLANE         # multiple of 8
        br = max(_SUBLANE, min(br, max_rows))
    grid = (pl.cdiv(rows, br),)

    nbytes = x2d.size * x2d.dtype.itemsize
    cost = pl.CostEstimate(
        flops=26 * x2d.size,          # ~26 VPU ops / element
        transcendentals=x2d.size,     # 1 EUP reciprocal / element
        bytes_accessed=2 * nbytes,    # read x + write out
    )

    out2d = pl.pallas_call(
        _aug_rational_kernel,
        out_shape=jax.ShapeDtypeStruct((rows, width), orig_dtype),
        grid_spec=pltpu.PrefetchScalarGridSpec(
            num_scalar_prefetch=0,
            grid=grid,
            in_specs=[
                pl.BlockSpec(memory_space=pltpu.MemorySpace.SMEM),   # numerator
                pl.BlockSpec(memory_space=pltpu.MemorySpace.SMEM),   # denominator
                pl.BlockSpec(memory_space=pltpu.MemorySpace.SMEM),   # aug params
                # NOTE: the ragged boundary row-block reads past the end of
                # x2d (Pallas does not zero-fill input boundary blocks); the
                # kernel computes on garbage rows there.  Output writes are
                # masked so results stay correct, and Q >= 1 avoids div-by-0.
                # Do NOT add cross-tile reductions without masking those rows.
                pl.BlockSpec((br, width), lambda i: (i, 0)),         # x tile
            ],
            out_specs=pl.BlockSpec((br, width), lambda i: (i, 0)),
        ),
        compiler_params=pltpu.CompilerParams(
            dimension_semantics=("parallel",),
        ),
        cost_estimate=cost,
        # Reuse the activation's HBM buffer for the output when donated;
        # otherwise XLA would add a defensive copy, so keep it opt-in.
        input_output_aliases={3: 0} if donate_input else {},
    )(numerator, denominator, aug_params, x2d)

    out = out2d.reshape(-1)
    if n_pad:
        out = out[:n]
    return out.reshape(orig_shape)


def _reference(x, numerator, denominator, aug_params):
    """Pure-JAX reference of the same forward pass (exact divide)."""
    h, ib, v, ob = aug_params[0], aug_params[1], aug_params[2], aug_params[3]
    z = h * x.astype(jnp.float32) + ib
    p = jnp.zeros_like(z)
    for i in range(NUM_DEG, -1, -1):
        p = p * z + numerator[i]
    q = jnp.ones_like(z)
    zp = z
    for k in range(DEN_DEG):
        q = q + jnp.abs(denominator[k] * zp)
        zp = zp * z
    return (v * (p / q) + ob).astype(x.dtype)


if __name__ == "__main__":
    # Tolerance note: 2e-5 abs/rel covers the approx-reciprocal + one
    # Newton-Raphson divide even for a pessimistic (8-bit) hardware seed,
    # since Q >= 1 and |out| is bounded (~3) for these inputs; typical error
    # is ~1e-6.  Switch the kernel to approx=False for bit-tighter parity.
    ATOL = RTOL = 2e-5

    key = jax.random.PRNGKey(0)

    # 1) NCHW conv-net activation (B=2, C=4, H=16, W=16) = 2048 elements:
    #    no-copy lane-dense path (width=1024, 2 rows).
    x = jax.random.normal(key, (2, 4, 16, 16), dtype=jnp.float32)
    out = augmented_rational(x, NUMERATOR_INIT, DENOMINATOR_INIT, AUG_PARAMS_INIT)
    out = jax.block_until_ready(out)
    ref = _reference(x, NUMERATOR_INIT, DENOMINATOR_INIT, AUG_PARAMS_INIT)
    assert out.shape == x.shape and out.dtype == x.dtype
    assert jnp.allclose(out, ref, atol=ATOL, rtol=RTOL)

    # 2) Odd shape (3*5*7*11 = 1155 elements, not a multiple of 128) with
    #    non-trivial affine params: exercises the padded fallback path.
    x2 = jax.random.normal(jax.random.PRNGKey(1), (3, 5, 7, 11), dtype=jnp.float32)
    aug2 = jnp.array([1.25, 0.1, 0.9, -0.05], dtype=jnp.float32)
    out2 = augmented_rational(x2, NUMERATOR_INIT, DENOMINATOR_INIT, aug2)
    out2 = jax.block_until_ready(out2)
    ref2 = _reference(x2, NUMERATOR_INIT, DENOMINATOR_INIT, aug2)
    assert out2.shape == x2.shape and out2.dtype == x2.dtype
    assert jnp.allclose(out2, ref2, atol=ATOL, rtol=RTOL)

    # 3) Medium activation (8, 29, 32, 32) = 232 rows of 1024: exercises the
    #    multi-step pipelined grid (8 steps) with a masked ragged boundary
    #    row-block and no pad/slice copies.
    x3 = jax.random.normal(jax.random.PRNGKey(2), (8, 29, 32, 32), dtype=jnp.float32)
    out3 = augmented_rational(x3, NUMERATOR_INIT, DENOMINATOR_INIT, AUG_PARAMS_INIT)
    out3 = jax.block_until_ready(out3)
    ref3 = _reference(x3, NUMERATOR_INIT, DENOMINATOR_INIT, AUG_PARAMS_INIT)
    assert out3.shape == x3.shape and out3.dtype == x3.dtype
    assert jnp.allclose(out3, ref3, atol=ATOL, rtol=RTOL)

    print("KERNEL_OK")
</pallas_src>

<mosaic_0001>
module attributes {stable_mosaic.version = 11 : i64} {
  func.func @_aug_rational_kernel(%arg0: i32, %arg1: memref<6xf32, #tpu.memory_space<smem>>, %arg2: memref<4xf32, #tpu.memory_space<smem>>, %arg3: memref<4xf32, #tpu.memory_space<smem>>, %arg4: memref<2x1024xf32, #tpu.memory_space<vmem>>, %arg5: memref<2x1024xf32, #tpu.memory_space<vmem>>) attributes {dimension_semantics = [#tpu.dimension_semantics<parallel>], iteration_bounds = array<i64: 1>, scalar_prefetch = 0 : i64, scratch_operands = 0 : i64, tpu.core_type = #tpu.core_type<tc>, window_params = [{transform_indices = @transform_0, window_bounds = array<i64: 6>}, {transform_indices = @transform_1, window_bounds = array<i64: 4>}, {transform_indices = @transform_2, window_bounds = array<i64: 4>}, {transform_indices = @transform_3, window_bounds = array<i64: 2, 1024>}, {transform_indices = @transform_4, window_bounds = array<i64: 2, 1024>}]} {
    %c0 = arith.constant 0 : index
    %c0_0 = arith.constant 0 : index
    %0 = vector.load %arg4[%c0, %c0_0] : memref<2x1024xf32, #tpu.memory_space<vmem>>, vector<2x1024xf32>
    %c0_1 = arith.constant 0 : index
    %1 = memref.load %arg3[%c0_1] : memref<4xf32, #tpu.memory_space<smem>>
    %c1 = arith.constant 1 : index
    %2 = memref.load %arg3[%c1] : memref<4xf32, #tpu.memory_space<smem>>
    %c2 = arith.constant 2 : index
    %3 = memref.load %arg3[%c2] : memref<4xf32, #tpu.memory_space<smem>>
    %c3 = arith.constant 3 : index
    %4 = memref.load %arg3[%c3] : memref<4xf32, #tpu.memory_space<smem>>
    %c0_2 = arith.constant 0 : index
    %5 = memref.load %arg1[%c0_2] : memref<6xf32, #tpu.memory_space<smem>>
    %6 = arith.mulf %3, %5 : f32
    %c1_3 = arith.constant 1 : index
    %7 = memref.load %arg1[%c1_3] : memref<6xf32, #tpu.memory_space<smem>>
    %8 = arith.mulf %3, %7 : f32
    %c2_4 = arith.constant 2 : index
    %9 = memref.load %arg1[%c2_4] : memref<6xf32, #tpu.memory_space<smem>>
    %10 = arith.mulf %3, %9 : f32
    %c3_5 = arith.constant 3 : index
    %11 = memref.load %arg1[%c3_5] : memref<6xf32, #tpu.memory_space<smem>>
    %12 = arith.mulf %3, %11 : f32
    %c4 = arith.constant 4 : index
    %13 = memref.load %arg1[%c4] : memref<6xf32, #tpu.memory_space<smem>>
    %14 = arith.mulf %3, %13 : f32
    %c5 = arith.constant 5 : index
    %15 = memref.load %arg1[%c5] : memref<6xf32, #tpu.memory_space<smem>>
    %16 = arith.mulf %3, %15 : f32
    %c0_6 = arith.constant 0 : index
    %17 = memref.load %arg2[%c0_6] : memref<4xf32, #tpu.memory_space<smem>>
    %18 = math.absf %17 : f32
    %c1_7 = arith.constant 1 : index
    %19 = memref.load %arg2[%c1_7] : memref<4xf32, #tpu.memory_space<smem>>
    %20 = math.absf %19 : f32
    %c2_8 = arith.constant 2 : index
    %21 = memref.load %arg2[%c2_8] : memref<4xf32, #tpu.memory_space<smem>>
    %22 = math.absf %21 : f32
    %c3_9 = arith.constant 3 : index
    %23 = memref.load %arg2[%c3_9] : memref<4xf32, #tpu.memory_space<smem>>
    %24 = math.absf %23 : f32
    %25 = vector.broadcast %1 : f32 to vector<2x1024xf32>
    %26 = arith.mulf %25, %0 : vector<2x1024xf32>
    %27 = vector.broadcast %2 : f32 to vector<2x1024xf32>
    %28 = arith.addf %26, %27 : vector<2x1024xf32>
    %29 = vector.broadcast %16 : f32 to vector<2x1024xf32>
    %30 = arith.mulf %29, %28 : vector<2x1024xf32>
    %31 = vector.broadcast %14 : f32 to vector<2x1024xf32>
    %32 = arith.addf %30, %31 : vector<2x1024xf32>
    %33 = arith.mulf %32, %28 : vector<2x1024xf32>
    %34 = vector.broadcast %12 : f32 to vector<2x1024xf32>
    %35 = arith.addf %33, %34 : vector<2x1024xf32>
    %36 = arith.mulf %35, %28 : vector<2x1024xf32>
    %37 = vector.broadcast %10 : f32 to vector<2x1024xf32>
    %38 = arith.addf %36, %37 : vector<2x1024xf32>
    %39 = arith.mulf %38, %28 : vector<2x1024xf32>
    %40 = vector.broadcast %8 : f32 to vector<2x1024xf32>
    %41 = arith.addf %39, %40 : vector<2x1024xf32>
    %42 = arith.mulf %41, %28 : vector<2x1024xf32>
    %43 = vector.broadcast %6 : f32 to vector<2x1024xf32>
    %44 = arith.addf %42, %43 : vector<2x1024xf32>
    %45 = math.absf %28 : vector<2x1024xf32>
    %46 = vector.broadcast %24 : f32 to vector<2x1024xf32>
    %47 = arith.mulf %46, %45 : vector<2x1024xf32>
    %48 = vector.broadcast %22 : f32 to vector<2x1024xf32>
    %49 = arith.addf %47, %48 : vector<2x1024xf32>
    %50 = arith.mulf %49, %45 : vector<2x1024xf32>
    %51 = vector.broadcast %20 : f32 to vector<2x1024xf32>
    %52 = arith.addf %50, %51 : vector<2x1024xf32>
    %53 = arith.mulf %52, %45 : vector<2x1024xf32>
    %54 = vector.broadcast %18 : f32 to vector<2x1024xf32>
    %55 = arith.addf %53, %54 : vector<2x1024xf32>
    %56 = arith.mulf %55, %45 : vector<2x1024xf32>
    %cst = arith.constant 1.000000e+00 : f32
    %57 = vector.broadcast %cst : f32 to vector<2x1024xf32>
    %58 = arith.addf %56, %57 : vector<2x1024xf32>
    %59 = tpu.reciprocal %58 {approx = true} : vector<2x1024xf32> -> vector<2x1024xf32>
    %60 = arith.mulf %58, %59 : vector<2x1024xf32>
    %cst_10 = arith.constant 2.000000e+00 : f32
    %61 = vector.broadcast %cst_10 : f32 to vector<2x1024xf32>
    %62 = arith.subf %61, %60 : vector<2x1024xf32>
    %63 = arith.mulf %59, %62 : vector<2x1024xf32>
    %64 = arith.mulf %44, %63 : vector<2x1024xf32>
    %65 = vector.broadcast %4 : f32 to vector<2x1024xf32>
    %66 = arith.addf %64, %65 : vector<2x1024xf32>
    %c0_11 = arith.constant 0 : index
    %c0_12 = arith.constant 0 : index
    %67 = vector.load %arg5[%c0_11, %c0_12] : memref<2x1024xf32, #tpu.memory_space<vmem>>, vector<2x1024xf32>
    tpu.vector_store %arg5[%c0_11, %c0_12], %66 {strides = array<i32>} : memref<2x1024xf32, #tpu.memory_space<vmem>>, vector<2x1024xf32>,
    return
  }
  func.func @transform_0(%arg0: i32) -> i32 {
    %c0_i32 = arith.constant 0 : i32
    %c0_i32_0 = arith.constant 0 : i32
    return %c0_i32 : i32
  }
  func.func @transform_1(%arg0: i32) -> i32 {
    %c0_i32 = arith.constant 0 : i32
    %c0_i32_0 = arith.constant 0 : i32
    return %c0_i32 : i32
  }
  func.func @transform_2(%arg0: i32) -> i32 {
    %c0_i32 = arith.constant 0 : i32
    %c0_i32_0 = arith.constant 0 : i32
    return %c0_i32 : i32
  }
  func.func @transform_3(%arg0: i32) -> (i32, i32) {
    %c0_i32 = arith.constant 0 : i32
    %c0_i32_0 = arith.constant 0 : i32
    return %arg0, %c0_i32 : i32, i32
  }
  func.func @transform_4(%arg0: i32) -> (i32, i32) {
    %c0_i32 = arith.constant 0 : i32
    %c0_i32_0 = arith.constant 0 : i32
    return %arg0, %c0_i32 : i32, i32
  }
}

</mosaic_0001>

<bundles_post_ra>
// kernel: augmented_rational.1
= control target key start
LH: loop header
LB: loop body
LE: loop exit
PB: predicated region body
PF: predicated region fallthrough
CT: control target
= control target key end

     0   :  { %9 = vsyncpa [#allocation3], 0  ;;  %s283_s0 = inlined_call_operand.vmem [shape: f32[6], index: 0, kind: input, shape index: {}]   ;;  %s284_s1 = inlined_call_operand.vmem [shape: f32[4], index: 1, kind: input, shape index: {}]   ;;  %s285_s2 = inlined_call_operand.vmem [shape: f32[4], index: 2, kind: input, shape index: {}]   ;;  %s286_s3 = inlined_call_operand.vmem [shape: f32[2,1024], index: 3, kind: input, shape index: {}]   ;;  %s287_s4 = inlined_call_operand.vmem [shape: f32[2,1024], index: 4, kind: output, shape index: {}]  }
   0x1   :  { %10 = vsyncpa [#allocation5], 0  ;;  %s27_s17 = sshll.u32 %s284_s1, 4  ;;  %s17_s20 = sshll.u32 %s283_s0, 4  ;;  %s28_s17 = int_to_ptr.vmem [resolvable:$true] %s27_s17  ;;  %s18_s20 = int_to_ptr.vmem [resolvable:$true] %s17_s20 }
   0x2   :  { %s172_s21 = scalar_lea.vmem %s28_s17, 16  ;;  %p177_p1 = scmp.lt.s32.totalorder %s28_s17, %s28_s17 }
   0x3   :  { %p173_p0 = scmp.ne.s32.totalorder %s28_s17, %s172_s21  ;;  %p178_p2 = scmp.lt.s32.totalorder %s172_s21, %s172_s21 }
   0x5   :  { %p179_p3 = por %p178_p2, %p177_p1 }
   0x7   :  { %p180_p4 = pnand %p179_p3, %p173_p0 }
   0x9   :  { %183 = shalt.err (!%p180_p4)
}
   0xa   :  { %s212_s22 = smov [#allocation4]   ;;  %s184_s23 = scalar_lea.vmem %s18_s20, 16 }
   0xb   :  { %30 = dma.vmem_to_smem %s28_s17, 16, %s212_s22, [#allocation5]  }
   0xc   :  { %p185_p5 = scmp.ne.s32.totalorder %s18_s20, %s184_s23  ;;  %p189_p6 = scmp.lt.s32.totalorder %s18_s20, %s18_s20 }
   0xd   :  { %p190_p7 = scmp.lt.s32.totalorder %s184_s23, %s184_s23 }
   0xf   :  { %p191_p8 = por %p190_p7, %p189_p6 }
  0x11   :  { %p192_p9 = pnand %p191_p8, %p185_p5 }
  0x13   :  { %195 = shalt.err (!%p192_p9)
}
  0x14   :  { %s213_s1 = smov [#allocation2]   ;;  %s37_s25 = sshll.u32 %s285_s2, 4  ;;  %s38_s25 = int_to_ptr.vmem [resolvable:$true] %s37_s25 }
  0x15   :  { %20 = dma.vmem_to_smem %s18_s20, 16, %s213_s1, [#allocation3]  }
  0x16   :  { %s196_s26 = scalar_lea.vmem %s38_s25, 16  ;;  %p201_p11 = scmp.lt.s32.totalorder %s38_s25, %s38_s25 }
  0x17   :  { %p197_p10 = scmp.ne.s32.totalorder %s38_s25, %s196_s26  ;;  %p202_p12 = scmp.lt.s32.totalorder %s196_s26, %s196_s26 }
  0x19   :  { %p203_p13 = por %p202_p12, %p201_p11 }
  0x1b   :  { %p204_p0 = pnand %p203_p13, %p197_p10 }
  0x1d   :  { %207 = shalt.err (!%p204_p0)
}
  0x1e   :  { %s214_s27 = smov [#allocation6]  }
  0x1f   :  { %40 = dma.vmem_to_smem %s38_s25, 16, %s214_s27, [#allocation5]  }
  0x20   :  { %208 = dma.done.wait [#allocation3], 16  }
  0x21   :  { %209 = vsyncadd [#allocation3], 4294967280 }
  0x22   :  { %210 = dma.done.wait [#allocation5], 32  }
  0x23   :  { %211 = vsyncadd [#allocation5], 4294967264 }
  0x24   :  { %52 = sfence }
  0x25   :  { %s55_s28 = sld [smem:[#allocation6]]  ;;  %s154_s29 = sld [smem:[#allocation6 + $0x1]]  ;;  %v53_v0 = vld [vmem:[%s286_s3] sm:$0xff]  ;;  %v54_v1 = vld [vmem:[%s286_s3 + $0x8] sm:$0xff] }
  0x26   :  { %s160_s2 = sld [smem:[#allocation2 + $0x4]]  ;;  %s255_s8 = sld [smem:[#allocation6 + $0x2]] }
  0x27   :  { %s161_s9 = sld [smem:[#allocation2 + $0x5]]  ;;  %s163_s10 = sld [smem:[#allocation4 + $0x2]] }
  0x28   :  { %s164_s11 = sld [smem:[#allocation4 + $0x3]]  ;;  %s162_s13 = sld [smem:[#allocation4 + $0x1]] }
  0x29   :  { %s159_s12 = sld [smem:[#allocation2 + $0x3]]  ;;  %s260_s15 = sld [smem:[#allocation4]] }
  0x2a   :  { %s264_s17 = sld [smem:[#allocation2 + $0x2]]  ;;  %s157_s22 = sld [smem:[#allocation2 + $0x1]] }
  0x2b   :  { %v79_v2 = vstv %s55_s28  ;;  %v82_v3 = vstv %s154_s29  ;;  %s59_s1 = sld [smem:[#allocation2]]  ;;  %s156_s25 = sld [smem:[#allocation6 + $0x3]] }
  0x2c   :  { %v80_v4 = vmul.f32 %v79_v2, %v53_v0  ;;  %v81_v5 = vmul.f32 %v79_v2, %v54_v1  ;;  %s68_s14 = smul.f32 %s160_s2, %s255_s8 }
  0x2d   :  { %s70_s3 = smul.f32 %s161_s9, %s255_s8  ;;  %s76_s16 = sand.u32 2147483647, %s163_s10 }
  0x2e   :  { %v83_v6 = vadd.f32 %v82_v3, %v80_v4  ;;  %v257_v7 = vadd.f32 %v82_v3, %v81_v5  ;;  %s78_s18 = sand.u32 2147483647, %s164_s11  ;;  %v88_v11 = vstv %s68_s14  ;;  %v116_v13 = vstv %s76_s16  ;;  %s74_s20 = sand.u32 2147483647, %s162_s13 }
  0x2f   :  { %s66_s19 = smul.f32 %s159_s12, %s255_s8  ;;  %v85_v10 = vstv %s70_s3  ;;  %v113_v12 = vstv %s78_s18  ;;  %v121_v23 = vstv %s74_s20  ;;  %s72_s21 = sand.u32 2147483647, %s260_s15 }
  0x30   :  { %v111_v8 = vand.u32 2147483647, %v83_v6  ;;  %v112_v9 = vand.u32 2147483647, %v257_v7  ;;  %v86_v14 = vmul.f32 %v85_v10, %v83_v6  ;;  %v87_v16 = vmul.f32 %v85_v10, %v257_v7  ;;  %s64_s23 = smul.f32 %s264_s17, %s255_s8 }
  0x31   :  { %v93_v22 = vstv %s66_s19  ;;  %v126_v32 = vstv %s72_s21  ;;  %s62_s0 = smul.f32 %s157_s22, %s255_s8  ;;  %v143_v63 = vstv %s156_s25 }
  0x32   :  { %v114_v15 = vmul.f32 %v113_v12, %v111_v8  ;;  %v115_v17 = vmul.f32 %v113_v12, %v112_v9  ;;  %v89_v18 = vadd.f32 %v88_v11, %v86_v14  ;;  %v90_v20 = vadd.f32 %v88_v11, %v87_v16  ;;  %s60_s24 = smul.f32 %s255_s8, %s59_s1 }
  0x33   :  { %v98_v36 = vstv %s64_s23  ;;  %v103_v47 = vstv %s62_s0 }
  0x34   :  { %v117_v19 = vadd.f32 %v116_v13, %v114_v15  ;;  %v118_v21 = vadd.f32 %v116_v13, %v115_v17  ;;  %v91_v24 = vmul.f32 %v89_v18, %v83_v6  ;;  %v92_v26 = vmul.f32 %v90_v20, %v257_v7 }
  0x35   :  { %v108_v53 = vstv %s60_s24 }
  0x36   :  { %v119_v25 = vmul.f32 %v117_v19, %v111_v8  ;;  %v120_v27 = vmul.f32 %v118_v21, %v112_v9  ;;  %v94_v28 = vadd.f32 %v93_v22, %v91_v24  ;;  %v95_v30 = vadd.f32 %v93_v22, %v92_v26 }
  0x38   :  { %v122_v29 = vadd.f32 %v121_v23, %v119_v25  ;;  %v123_v31 = vadd.f32 %v121_v23, %v120_v27  ;;  %v96_v35 = vmul.f32 %v94_v28, %v83_v6  ;;  %v97_v38 = vmul.f32 %v95_v30, %v257_v7 }
  0x3a   :  { %v124_v33 = vmul.f32 %v122_v29, %v111_v8  ;;  %v125_v34 = vmul.f32 %v123_v31, %v112_v9  ;;  %v99_v42 = vadd.f32 %v98_v36, %v96_v35  ;;  %v100_v44 = vadd.f32 %v98_v36, %v97_v38 }
  0x3c   :  { %v127_v37 = vadd.f32 %v126_v32, %v124_v33  ;;  %v128_v39 = vadd.f32 %v126_v32, %v125_v34  ;;  %v101_v46 = vmul.f32 %v99_v42, %v83_v6  ;;  %v102_v48 = vmul.f32 %v100_v44, %v257_v7 }
  0x3e   :  { %v129_v40 = vmul.f32 %v127_v37, %v111_v8  ;;  %v130_v41 = vmul.f32 %v128_v39, %v112_v9  ;;  %v104_v49 = vadd.f32 %v103_v47, %v101_v46  ;;  %v105_v50 = vadd.f32 %v103_v47, %v102_v48 }
  0x40   :  { %v131_v43 = vadd.f32 1.0, %v129_v40  ;;  %v132_v45 = vadd.f32 1.0, %v130_v41  ;;  %v106_v51 = vmul.f32 %v104_v49, %v83_v6  ;;  %v107_v54 = vmul.f32 %v105_v50, %v257_v7 }
  0x42   :  { %168 = vrcp.f32 %v131_v43  ;;  %v109_v58 = vadd.f32 %v108_v53, %v106_v51  ;;  %v110_v60 = vadd.f32 %v108_v53, %v107_v54 }
  0x43   :  { %170 = vrcp.f32 %v132_v45 }
  0x4c   :  { %v169_v52 = vpop.eup %168 }
  0x4d   :  { %v171_v55 = vpop.eup %170  ;;  %v135_v56 = vmul.f32 %v169_v52, %v131_v43 }
  0x4e   :  { %v136_v57 = vmul.f32 %v171_v55, %v132_v45 }
  0x4f   :  { %v137_v59 = vsub.f32 2.0, %v135_v56 }
  0x50   :  { %v138_v61 = vsub.f32 2.0, %v136_v57 }
  0x51   :  { %v139_v62 = vmul.f32 %v169_v52, %v137_v59 }
  0x52   :  { %v140_v0 = vmul.f32 %v171_v55, %v138_v61 }
  0x53   :  { %v141_v1 = vmul.f32 %v139_v62, %v109_v58 }
  0x54   :  { %v142_v2 = vmul.f32 %v140_v0, %v110_v60 }
  0x55   :  { %v144_v3 = vadd.f32 %v143_v63, %v141_v1 }
  0x56   :  { %v145_v4 = vadd.f32 %v143_v63, %v142_v2 }
  0x57   :  { %146 = vst [vmem:[%s287_s4] sm:$0xff] %v144_v3 }
  0x58   :  { %147 = vst [vmem:[%s287_s4 + $0x8] sm:$0xff] %v145_v4 }
  0x59   :  { %152 = vsyncpa [#allocation3], 1 }
  0x5a   :  { %153 = vsyncpa [#allocation5], 1 }

</bundles_post_ra>
